<compile_context>
chip_gen: v5e
topology: v5e:2x2
jax: 0.10.0
libtpu: 0.0.40
codegen_flags: <defaults>
</compile_context>

<pallas_src>
import functools
import math

import jax
import jax.numpy as jnp
from jax import lax
from jax.experimental import pallas as pl
from jax.experimental.pallas import tpu as pltpu

HIDDEN = 64
NUM_HEADS = 4  # columns: [position_size, funding_sensitivity, expected_return, expected_risk]


def _round_up(n, m):
    return ((n + m - 1) // m) * m


def _kelly_kernel(x_ref, w1_ref, b1_ref, w2_ref, b2_ref, fr_ref, out_ref, *,
                  use_funding):
    # x_ref: (TB, D)   w1_ref: (D, 64)   b1_ref: (1, 64)
    # w2_ref: (64, 4)  b2_ref: (1, 4)    fr_ref: (TB, 1)   out_ref: (TB, 4)
    x = x_ref[...]
    h = jnp.dot(x, w1_ref[...], preferred_element_type=jnp.float32) + b1_ref[...]
    # SiLU: h * sigmoid(h)  (exp lands on the EUP slot, mul/add on the VPU).
    shared = h * (1.0 / (1.0 + jnp.exp(-h)))

    # All four Linear(64, 1) heads fused into a single (64, 4) matmul.
    heads = jnp.dot(shared, w2_ref[...], preferred_element_type=jnp.float32)
    heads = heads + b2_ref[...]

    # Per-column activations via lane masks (no per-head slices/stores):
    #   col 0: tanh      (position_size)
    #   col 1: tanh      (funding_sensitivity)
    #   col 2: identity  (expected_return)
    #   col 3: softplus  (expected_risk)
    cols = lax.broadcasted_iota(jnp.int32, heads.shape, 1)
    tanh_h = jnp.tanh(heads)
    softplus_h = jnp.maximum(heads, 0.0) + jnp.log(1.0 + jnp.exp(-jnp.abs(heads)))
    out = jnp.where(cols == 2, heads, tanh_h)
    out = jnp.where(cols == 3, softplus_h, out)

    if use_funding:
        fs = tanh_h[:, 1:2]                                 # (TB, 1) funding sens.
        adj = jnp.clip(fs * fr_ref[...], -1.0, 1.0)
        pos_adj = jnp.clip(out + 0.2 * adj, -1.0, 1.0)      # only col 0 is kept
        out = jnp.where(cols == 0, pos_adj, out)

    out_ref[...] = out.astype(out_ref.dtype)


def kelly_head(x, params, funding_rate=None, *, block_b=128):
    """Forward pass of SimplifiedNeuralKellyHead.

    x: (B, D) float32.  params: dict of PyTorch-layout Linear weights/biases.
    Returns a dict of (B, 1) arrays matching the PyTorch module's output dict.
    """
    B, D = x.shape

    # Parameter glue (tiny, one-time): fold the four heads into one (64, 4).
    w1 = params["shared_w"].T.astype(jnp.float32)                       # (D, 64)
    b1 = params["shared_b"].reshape(1, HIDDEN).astype(jnp.float32)
    w2 = jnp.concatenate(
        [params["size_w"].T, params["fs_w"].T,
         params["er_w"].T, params["risk_w"].T], axis=1).astype(jnp.float32)  # (64, 4)
    b2 = jnp.concatenate(
        [params["size_b"], params["fs_b"],
         params["er_b"], params["risk_b"]]).reshape(1, NUM_HEADS).astype(jnp.float32)

    # Batch tiling: TB rows per grid step (multiple of 8 sublanes, capped).
    tb = min(block_b, _round_up(B, 8))
    b_pad = _round_up(B, tb)
    if b_pad != B:
        x = jnp.pad(x, ((0, b_pad - B), (0, 0)))

    use_funding = funding_rate is not None
    if use_funding:
        fr = jnp.asarray(funding_rate, jnp.float32).reshape(-1, 1)
        fr = jnp.broadcast_to(fr, (B, 1))
        fr = jnp.pad(fr, ((0, b_pad - B), (0, 0)))
    else:
        fr = jnp.zeros((b_pad, 1), jnp.float32)

    kernel = functools.partial(_kelly_kernel, use_funding=use_funding)

    out = pl.pallas_call(
        kernel,
        out_shape=jax.ShapeDtypeStruct((b_pad, NUM_HEADS), jnp.float32),
        grid=(b_pad // tb,),
        in_specs=[
            pl.BlockSpec((tb, D), lambda i: (i, 0)),
            pl.BlockSpec((D, HIDDEN), lambda i: (0, 0)),
            pl.BlockSpec((1, HIDDEN), lambda i: (0, 0)),
            pl.BlockSpec((HIDDEN, NUM_HEADS), lambda i: (0, 0)),
            pl.BlockSpec((1, NUM_HEADS), lambda i: (0, 0)),
            pl.BlockSpec((tb, 1), lambda i: (i, 0)),
        ],
        out_specs=pl.BlockSpec((tb, NUM_HEADS), lambda i: (i, 0)),
        compiler_params=pltpu.CompilerParams(
            dimension_semantics=("parallel",)),
    )(x, w1, b1, w2, b2, fr)

    out = out[:B]
    return {
        "position_size": out[:, 0:1],
        "expected_return": out[:, 2:3],
        "expected_risk": out[:, 3:4],
        "funding_sensitivity": out[:, 1:2],
    }


def _reference(x, params, funding_rate=None):
    """Pure-JAX reference matching the PyTorch module semantics."""
    hp = lax.Precision.HIGHEST
    h = jnp.dot(x, params["shared_w"].T, precision=hp) + params["shared_b"]
    shared = h * jax.nn.sigmoid(h)                      # SiLU

    def head(w, b):
        return jnp.dot(shared, w.T, precision=hp) + b

    pos = jnp.tanh(head(params["size_w"], params["size_b"]))
    fs = jnp.tanh(head(params["fs_w"], params["fs_b"]))
    er = head(params["er_w"], params["er_b"])
    risk = jax.nn.softplus(head(params["risk_w"], params["risk_b"]))
    if funding_rate is not None:
        fr = jnp.asarray(funding_rate, jnp.float32).reshape(-1, 1)
        adj = jnp.clip(fs * fr, -1.0, 1.0)
        pos = jnp.clip(pos + 0.2 * adj, -1.0, 1.0)
    return {"position_size": pos, "expected_return": er,
            "expected_risk": risk, "funding_sensitivity": fs}


if __name__ == "__main__":
    input_dim = 32
    B = 2

    key = jax.random.PRNGKey(0)
    keys = jax.random.split(key, 12)

    def linear_init(kw, kb, fan_out, fan_in):
        # Mirrors PyTorch nn.Linear default init bounds (U(-1/sqrt(fan_in), ..)).
        bound = 1.0 / math.sqrt(fan_in)
        w = jax.random.uniform(kw, (fan_out, fan_in), minval=-bound,
                               maxval=bound, dtype=jnp.float32)
        b = jax.random.uniform(kb, (fan_out,), minval=-bound,
                               maxval=bound, dtype=jnp.float32)
        return w, b

    shared_w, shared_b = linear_init(keys[0], keys[1], HIDDEN, input_dim)
    size_w, size_b = linear_init(keys[2], keys[3], 1, HIDDEN)
    fs_w, fs_b = linear_init(keys[4], keys[5], 1, HIDDEN)
    er_w, er_b = linear_init(keys[6], keys[7], 1, HIDDEN)
    risk_w, risk_b = linear_init(keys[8], keys[9], 1, HIDDEN)

    params = dict(shared_w=shared_w, shared_b=shared_b,
                  size_w=size_w, size_b=size_b,
                  fs_w=fs_w, fs_b=fs_b,
                  er_w=er_w, er_b=er_b,
                  risk_w=risk_w, risk_b=risk_b)

    x = jax.random.normal(keys[10], (B, input_dim), dtype=jnp.float32)
    funding_rate = 0.5 * jax.random.normal(keys[11], (B, 1), dtype=jnp.float32)

    # Path with funding_rate (exercises clamp + adjustment).
    out = jax.block_until_ready(kelly_head(x, params, funding_rate))
    ref = _reference(x, params, funding_rate)
    for k in ("position_size", "expected_return", "expected_risk",
              "funding_sensitivity"):
        assert out[k].shape == (B, 1), (k, out[k].shape)
        assert jnp.allclose(out[k], ref[k], atol=1e-4, rtol=1e-4), (
            k, float(jnp.max(jnp.abs(out[k] - ref[k]))))

    # Path without funding_rate.
    out2 = jax.block_until_ready(kelly_head(x, params, None))
    ref2 = _reference(x, params, None)
    for k in out2:
        assert jnp.allclose(out2[k], ref2[k], atol=1e-4, rtol=1e-4), (
            k, float(jnp.max(jnp.abs(out2[k] - ref2[k]))))

    print("KERNEL_OK")
</pallas_src>

<mosaic_0001>
module attributes {stable_mosaic.version = 11 : i64} {
  func.func @_kelly_kernel(%arg0: i32, %arg1: memref<8x32xf32, #tpu.memory_space<vmem>>, %arg2: memref<32x64xf32, #tpu.memory_space<vmem>>, %arg3: memref<1x64xf32, #tpu.memory_space<vmem>>, %arg4: memref<64x4xf32, #tpu.memory_space<vmem>>, %arg5: memref<1x4xf32, #tpu.memory_space<vmem>>, %arg6: memref<8x1xf32, #tpu.memory_space<vmem>>, %arg7: memref<8x4xf32, #tpu.memory_space<vmem>>) attributes {dimension_semantics = [#tpu.dimension_semantics<parallel>], iteration_bounds = array<i64: 1>, scalar_prefetch = 0 : i64, scratch_operands = 0 : i64, tpu.core_type = #tpu.core_type<tc>, window_params = [{transform_indices = @transform_0, window_bounds = array<i64: 8, 32>}, {pipeline_mode = #tpu.pipeline_mode<synchronous>, transform_indices = @transform_1, window_bounds = array<i64: 32, 64>}, {pipeline_mode = #tpu.pipeline_mode<synchronous>, transform_indices = @transform_2, window_bounds = array<i64: 1, 64>}, {pipeline_mode = #tpu.pipeline_mode<synchronous>, transform_indices = @transform_3, window_bounds = array<i64: 64, 4>}, {pipeline_mode = #tpu.pipeline_mode<synchronous>, transform_indices = @transform_4, window_bounds = array<i64: 1, 4>}, {transform_indices = @transform_5, window_bounds = array<i64: 8, 1>}, {transform_indices = @transform_6, window_bounds = array<i64: 8, 4>}]} {
    %c0 = arith.constant 0 : index
    %c0_0 = arith.constant 0 : index
    %0 = vector.load %arg1[%c0, %c0_0] : memref<8x32xf32, #tpu.memory_space<vmem>>, vector<8x32xf32>
    %c0_1 = arith.constant 0 : index
    %c0_2 = arith.constant 0 : index
    %1 = vector.load %arg2[%c0_1, %c0_2] : memref<32x64xf32, #tpu.memory_space<vmem>>, vector<32x64xf32>
    %cst = arith.constant dense<0.000000e+00> : vector<8x64xf32>
    %2 = tpu.matmul %0, %1, %cst {dimension_numbers = #tpu.dot_dimension_numbers<[1], [0], [0], [1], [0, 0, 1, 1], [], []>} : vector<8x32xf32>, vector<32x64xf32>, vector<8x64xf32> -> vector<8x64xf32>
    %c0_3 = arith.constant 0 : index
    %c0_4 = arith.constant 0 : index
    %3 = vector.load %arg3[%c0_3, %c0_4] : memref<1x64xf32, #tpu.memory_space<vmem>>, vector<1x64xf32>
    %4 = vector.broadcast %3 : vector<1x64xf32> to vector<8x64xf32>
    %5 = arith.addf %2, %4 : vector<8x64xf32>
    %cst_5 = arith.constant 0.000000e+00 : f32
    %6 = vector.broadcast %cst_5 : f32 to vector<8x64xf32>
    %7 = arith.subf %6, %5 : vector<8x64xf32>
    %8 = math.exp %7 : vector<8x64xf32>
    %cst_6 = arith.constant 1.000000e+00 : f32
    %9 = vector.broadcast %cst_6 : f32 to vector<8x64xf32>
    %10 = arith.addf %9, %8 : vector<8x64xf32>
    %cst_7 = arith.constant 1.000000e+00 : f32
    %11 = vector.broadcast %cst_7 : f32 to vector<8x64xf32>
    %12 = arith.divf %11, %10 : vector<8x64xf32>
    %13 = arith.mulf %5, %12 : vector<8x64xf32>
    %c0_8 = arith.constant 0 : index
    %c0_9 = arith.constant 0 : index
    %14 = vector.load %arg4[%c0_8, %c0_9] : memref<64x4xf32, #tpu.memory_space<vmem>>, vector<64x4xf32>
    %cst_10 = arith.constant dense<0.000000e+00> : vector<8x4xf32>
    %15 = tpu.matmul %13, %14, %cst_10 {dimension_numbers = #tpu.dot_dimension_numbers<[1], [0], [0], [1], [0, 0, 1, 1], [], []>} : vector<8x64xf32>, vector<64x4xf32>, vector<8x4xf32> -> vector<8x4xf32>
    %c0_11 = arith.constant 0 : index
    %c0_12 = arith.constant 0 : index
    %16 = vector.load %arg5[%c0_11, %c0_12] : memref<1x4xf32, #tpu.memory_space<vmem>>, vector<1x4xf32>
    %17 = vector.broadcast %16 : vector<1x4xf32> to vector<8x4xf32>
    %18 = arith.addf %15, %17 : vector<8x4xf32>
    %19 = tpu.iota {dimensions = array<i32: 1>} : vector<8x4xi32>
    %20 = math.tanh %18 : vector<8x4xf32>
    %cst_13 = arith.constant 0.000000e+00 : f32
    %21 = vector.broadcast %cst_13 : f32 to vector<8x4xf32>
    %22 = arith.maximumf %18, %21 : vector<8x4xf32>
    %23 = math.absf %18 : vector<8x4xf32>
    %cst_14 = arith.constant 0.000000e+00 : f32
    %24 = vector.broadcast %cst_14 : f32 to vector<8x4xf32>
    %25 = arith.subf %24, %23 : vector<8x4xf32>
    %26 = math.exp %25 : vector<8x4xf32>
    %cst_15 = arith.constant 1.000000e+00 : f32
    %27 = vector.broadcast %cst_15 : f32 to vector<8x4xf32>
    %28 = arith.addf %27, %26 : vector<8x4xf32>
    %29 = math.log %28 : vector<8x4xf32>
    %30 = arith.addf %22, %29 : vector<8x4xf32>
    %c2_i32 = arith.constant 2 : i32
    %31 = vector.broadcast %c2_i32 : i32 to vector<8x4xi32>
    %32 = arith.cmpi eq, %19, %31 : vector<8x4xi32>
    %33 = arith.select %32, %18, %20 : vector<8x4xi1>, vector<8x4xf32>
    %c3_i32 = arith.constant 3 : i32
    %34 = vector.broadcast %c3_i32 : i32 to vector<8x4xi32>
    %35 = arith.cmpi eq, %19, %34 : vector<8x4xi32>
    %36 = arith.select %35, %30, %33 : vector<8x4xi1>, vector<8x4xf32>
    %37 = vector.extract_strided_slice %20 {offsets = [0, 1], sizes = [8, 1], strides = [1, 1]} : vector<8x4xf32> to vector<8x1xf32>
    %c0_16 = arith.constant 0 : index
    %c0_17 = arith.constant 0 : index
    %38 = vector.load %arg6[%c0_16, %c0_17] : memref<8x1xf32, #tpu.memory_space<vmem>>, vector<8x1xf32>
    %39 = arith.mulf %37, %38 : vector<8x1xf32>
    %cst_18 = arith.constant -1.000000e+00 : f32
    %cst_19 = arith.constant 1.000000e+00 : f32
    %40 = vector.broadcast %cst_18 : f32 to vector<8x1xf32>
    %41 = arith.maximumf %40, %39 : vector<8x1xf32>
    %42 = vector.broadcast %cst_19 : f32 to vector<8x1xf32>
    %43 = arith.minimumf %42, %41 : vector<8x1xf32>
    %cst_20 = arith.constant 2.000000e-01 : f32
    %44 = vector.broadcast %cst_20 : f32 to vector<8x1xf32>
    %45 = arith.mulf %44, %43 : vector<8x1xf32>
    %46 = vector.broadcast %45 : vector<8x1xf32> to vector<8x4xf32>
    %47 = arith.addf %36, %46 : vector<8x4xf32>
    %cst_21 = arith.constant -1.000000e+00 : f32
    %cst_22 = arith.constant 1.000000e+00 : f32
    %48 = vector.broadcast %cst_21 : f32 to vector<8x4xf32>
    %49 = arith.maximumf %48, %47 : vector<8x4xf32>
    %50 = vector.broadcast %cst_22 : f32 to vector<8x4xf32>
    %51 = arith.minimumf %50, %49 : vector<8x4xf32>
    %c0_i32 = arith.constant 0 : i32
    %52 = vector.broadcast %c0_i32 : i32 to vector<8x4xi32>
    %53 = arith.cmpi eq, %19, %52 : vector<8x4xi32>
    %54 = arith.select %53, %51, %36 : vector<8x4xi1>, vector<8x4xf32>
    %c0_23 = arith.constant 0 : index
    %c0_24 = arith.constant 0 : index
    %55 = vector.load %arg7[%c0_23, %c0_24] : memref<8x4xf32, #tpu.memory_space<vmem>>, vector<8x4xf32>
    tpu.vector_store %arg7[%c0_23, %c0_24], %54 {strides = array<i32>} : memref<8x4xf32, #tpu.memory_space<vmem>>, vector<8x4xf32>,
    return
  }
  func.func @transform_0(%arg0: i32) -> (i32, i32) {
    %c0_i32 = arith.constant 0 : i32
    %c0_i32_0 = arith.constant 0 : i32
    return %arg0, %c0_i32 : i32, i32
  }
  func.func @transform_1(%arg0: i32) -> (i32, i32) {
    %c0_i32 = arith.constant 0 : i32
    %c0_i32_0 = arith.constant 0 : i32
    %c0_i32_1 = arith.constant 0 : i32
    return %c0_i32, %c0_i32_0 : i32, i32
  }
  func.func @transform_2(%arg0: i32) -> (i32, i32) {
    %c0_i32 = arith.constant 0 : i32
    %c0_i32_0 = arith.constant 0 : i32
    %c0_i32_1 = arith.constant 0 : i32
    return %c0_i32, %c0_i32_0 : i32, i32
  }
  func.func @transform_3(%arg0: i32) -> (i32, i32) {
    %c0_i32 = arith.constant 0 : i32
    %c0_i32_0 = arith.constant 0 : i32
    %c0_i32_1 = arith.constant 0 : i32
    return %c0_i32, %c0_i32_0 : i32, i32
  }
  func.func @transform_4(%arg0: i32) -> (i32, i32) {
    %c0_i32 = arith.constant 0 : i32
    %c0_i32_0 = arith.constant 0 : i32
    %c0_i32_1 = arith.constant 0 : i32
    return %c0_i32, %c0_i32_0 : i32, i32
  }
  func.func @transform_5(%arg0: i32) -> (i32, i32) {
    %c0_i32 = arith.constant 0 : i32
    %c0_i32_0 = arith.constant 0 : i32
    return %arg0, %c0_i32 : i32, i32
  }
  func.func @transform_6(%arg0: i32) -> (i32, i32) {
    %c0_i32 = arith.constant 0 : i32
    %c0_i32_0 = arith.constant 0 : i32
    return %arg0, %c0_i32 : i32, i32
  }
}

</mosaic_0001>

<bundles_post_ra>
// kernel: tpu_custom_call.1
= control target key start
LH: loop header
LB: loop body
LE: loop exit
PB: predicated region body
PF: predicated region fallthrough
CT: control target
= control target key end

     0   :  { %vm32_vm0 = vcmask 261120   ;;  %s172_s24 = smov 1   ;;  %vm88_vm5 = vcmask 523264   ;;  %v173_v32 = vmov 1   ;;  %v112_v34 = vlaneseq  ;;  %s260_s1 = inlined_call_operand.vmem [shape: f32[32,64], index: 1, kind: input, shape index: {}]   ;;  %s261_s2 = inlined_call_operand.vmem [shape: f32[1,64], index: 2, kind: input, shape index: {}]   ;;  %s262_s0 = inlined_call_operand.vmem [shape: f32[8,32], index: 0, kind: input, shape index: {}]   ;;  %s263_s4 = inlined_call_operand.vmem [shape: f32[1,4], index: 4, kind: input, shape index: {}]   ;;  %s264_s3 = inlined_call_operand.vmem [shape: f32[64,4], index: 3, kind: input, shape index: {}]   ;;  %s265_s5 = inlined_call_operand.vmem [shape: f32[8,1], index: 5, kind: input, shape index: {}]   ;;  %s266_s6 = inlined_call_operand.vmem [shape: f32[8,4], index: 6, kind: output, shape index: {}]  }
   0x1   :  { %v27_v0 = vld [vmem:[%s260_s1 + $0x18] sm:$0xff]  ;;  %v26_v1 = vld [vmem:[%s260_s1 + $0x10] sm:$0xff]  ;;  %v25_v2 = vld [vmem:[%s260_s1 + $0x8] sm:$0xff]  ;;  %159 = vset.pattern.permute.xlu0 %v173_v32  ;;  %vm147_vm9 = vcmask 31744  }
   0x2   :  { %48 = vmatpush.msra.mxu0 %v27_v0  ;;  %v24_v3 = vld [vmem:[%s260_s1] sm:$0xff]  ;;  %v83_v5 = vld [vmem:[%s264_s3 + $0x38] sm:$0xff]  ;;  %v82_v6 = vld [vmem:[%s264_s3 + $0x30] sm:$0xff]  ;;  %v113_v38 = vand.u32 127, %v112_v34 }
   0x3   :  { %v23_v4 = vld [vmem:[%s262_s0] sm:$0xff]  ;;  %100 = vmatpush.msra.mxu1 %v83_v5  ;;  %v81_v7 = vld [vmem:[%s264_s3 + $0x28] sm:$0xff]  ;;  %v79_v9 = vld [vmem:[%s264_s3 + $0x18] sm:$0xff] }
   0x4   :  { %49 = vmatpush.msra.mxu0 %v26_v1  ;;  %v80_v8 = vld [vmem:[%s264_s3 + $0x20] sm:$0xff]  ;;  %v78_v11 = vld [vmem:[%s264_s3 + $0x10] sm:$0xff]  ;;  %v77_v12 = vld [vmem:[%s264_s3 + $0x8] sm:$0xff]  ;;  %vm124_vm6 = vcmp.eq.s32.totalorder %v113_v38, 2  ;;  %vm126_vm7 = vcmp.eq.s32.totalorder %v113_v38, 3  ;;  %vm145_vm8 = vcmp.eq.s32.totalorder %v113_v38, 0 }
   0x5   :  { %101 = vmatpush.msra.mxu1 %v82_v6  ;;  %v160_v10 = vld [vmem:[%s261_s2] ss:$0 sm:$0xff] }
   0x6   :  { %50 = vmatpush.msra.mxu0 %v25_v2  ;;  %v76_v15 = vld [vmem:[%s264_s3] sm:$0xff] }
   0x7   :  { %102 = vmatpush.msra.mxu1 %v81_v7  ;;  %v128_v17 = vld [vmem:[%s265_s5] sm:$0xff] }
   0x8   :  { %51 = vmatpush.msra.mxu0 %v24_v3  ;;  %130 = vrot.lane.b32.xlu0 %v128_v17, %s172_s24  ;;  %v161_v33 = vld [vmem:[%s263_s4] ss:$0 sm:$0xff] }
   0x9   :  { %153 = vmatmul.msk.f32.vlgmr.msra.gmra.mxu0 %vm32_vm0, %v23_v4  ;;  %103 = vmatpush.msra.mxu1 %v80_v8 }
   0xb   :  { %104 = vmatpush.msra.mxu1 %v79_v9 }
   0xd   :  { %105 = vmatpush.msra.mxu1 %v78_v11 }
   0xf   :  { %106 = vmatpush.msra.mxu1 %v77_v12 }
  0x11   :  { %107 = vmatpush.msra.mxu1 %v76_v15 }
  0x7a   :  { %v131_v41 = vpop.permute.xlu0 %130 }
  0x86   :  { %v53_v13 = vpop.f32.mrf.mxu0 }
  0x87   :  { %v54_v14 = vadd.f32 %v160_v10, %v53_v13 }
  0x89   :  { %v56_v16 = vsub.f32 0.0, %v54_v14 }
  0x8b   :  { %v57_v18 = vmul.f32 1.442695, %v56_v16 }
  0x8d   :  { %162 = vpow2.f32 %v57_v18 }
  0x93   :  { %v163_v19 = vpop.eup %162 }
  0x94   :  { %v59_v20 = vadd.f32 1.0, %v163_v19 }
  0x96   :  { %164 = vrcp.f32 %v59_v20  ;;  %v71_v24 = vand.u32 2147483648, %v59_v20  ;;  %v69_v26 = vand.u32 2147483647, %v59_v20  ;;  %vm65_vm2 = vweird.f32 %v59_v20 }
  0x98   :  { %v72_v28 = vor.u32 1.1754944e-38, %v71_v24  ;;  %vm70_vm4 = vcmp.eq.f32.partialorder %v69_v26, 8.507059e+37 }
  0x9c   :  { %v165_v21 = vpop.eup %164 }
  0x9d   :  { %v61_v22 = vmul.f32 %v165_v21, %v59_v20  ;;  %vm66_vm1 = vweird.f32 %v165_v21 }
  0x9e   :  { %vm67_vm3 = vmor %vm65_vm2, %vm66_vm1 }
  0x9f   :  { %v62_v23 = vsub.f32 1.0, %v61_v22 }
  0xa1   :  { %v63_v25 = vmul.f32 %v165_v21, %v62_v23 }
  0xa3   :  { %v64_v27 = vadd.f32 %v165_v21, %v63_v25 }
  0xa5   :  { %v68_v29 = vsel %vm67_vm3, %v165_v21, %v64_v27 }
  0xa6   :  { %v73_v30 = vsel %vm70_vm4, %v72_v28, %v68_v29 }
  0xa7   :  { %v75_v31 = vmul.f32 %v73_v30, %v54_v14 }
  0xa9   :  { %154 = vmatmul.msk.f32.vlgmr.msra.gmra.mxu1 %vm88_vm5, %v75_v31 }
 0x126   :  { %v109_v35 = vpop.f32.mrf.mxu1 }
 0x127   :  { %v110_v36 = vadd.f32 %v161_v33, %v109_v35 }
 0x129   :  { %v116_v37 = vand.u32 2147483647, %v110_v36  ;;  %166 = vtanh.f32 %v110_v36  ;;  %v115_v50 = vmax.f32 %v110_v36, 0.0 }
 0x12b   :  { %v117_v39 = vsub.f32 0.0, %v116_v37 }
 0x12d   :  { %v118_v40 = vmul.f32 1.442695, %v117_v39 }
 0x12f   :  { %v167_v42 = vpop.eup %166  ;;  %168 = vpow2.f32 %v118_v40 }
 0x130   :  { %v133_v43 = vmul.f32 %v167_v42, %v131_v41  ;;  %v125_v44 = vsel %vm124_vm6, %v110_v36, %v167_v42 }
 0x132   :  { %v155_v45 = vclamps-f32 %v133_v43, 1.0 }
 0x134   :  { %v136_v46 = vmul.f32 0.2, %v155_v45 }
 0x135   :  { %v169_v47 = vpop.eup %168 }
 0x136   :  { %139 = vperm.xlu0 %159, %v136_v46   ;;  %v120_v48 = vadd.f32 1.0, %v169_v47 }
 0x138   :  { %170 = vlog2.f32 %v120_v48 }
 0x13e   :  { %v171_v49 = vpop.eup %170 }
 0x13f   :  { %v122_v51 = vmul.f32 0.6931472, %v171_v49 }
 0x141   :  { %v123_v52 = vadd.f32 %v122_v51, %v115_v50 }
 0x143   :  { %v127_v53 = vsel %vm126_vm7, %v123_v52, %v125_v44 }
 0x1a8   :  { %v140_v54 = vpop.permute.xlu0 %139 }
 0x1a9   :  { %v142_v55 = vadd.f32 %v140_v54, %v127_v53 }
 0x1ab   :  { %v156_v56 = vclamps-f32 %v142_v55, 1.0 }
 0x1ad   :  { %v146_v57 = vsel %vm145_vm8, %v156_v56, %v127_v53 }
 0x1ae   :  { %148 = vst.msk [vmem:[%s266_s6] sm:$0xff] %vm147_vm9, %v146_v57 }

</bundles_post_ra>
